<compile_context>
chip_gen: v7x
topology: tpu7x:2x2x1
jax: 0.10.0
libtpu: 0.0.40
codegen_flags: <defaults>
</compile_context>

<pallas_src>
import functools

import jax
import jax.numpy as jnp
from jax.experimental import pallas as pl
from jax.experimental.pallas import tpu as pltpu


# Per-buffer VMEM budget for the pred tile (double-buffered by the pipeline),
# leaving headroom for in-kernel f32 temporaries on v7x's 64 MiB VMEM.
_PRED_TILE_BUDGET_BYTES = 8 * 1024 * 1024
_VMEM_LIMIT_BYTES = 48 * 1024 * 1024
_MAX_TILE_N = 512


def _choose_tile_n(n, c, itemsize):
    """Largest batch tile that fits the per-buffer budget, sublane-aligned."""
    if n <= 8:
        return n  # block == full extent, always legal
    rows = _PRED_TILE_BUDGET_BYTES // max(1, c * itemsize)
    tile = min(_MAX_TILE_N, max(8, rows), n)
    return max(8, (tile // 8) * 8)


def _label_smoothing_kernel(target_ref, pred_ref, partial_ref, *,
                            n_total, tile_n, fill, confidence):
    pred = pred_ref[...].astype(jnp.float32)          # (tile_n, C)
    tgt = target_ref[...]                             # (tile_n, 1) int32
    tn, c = pred.shape

    # Per-row log-sum-exp pieces (numerically stable, all f32).
    m = jnp.max(pred, axis=-1, keepdims=True)                              # (tn,1)
    lse = jnp.log(jnp.sum(jnp.exp(pred - m), axis=-1, keepdims=True))      # (tn,1)
    sum_pred = jnp.sum(pred, axis=-1, keepdims=True)                       # (tn,1)

    # pred value at the target class via masked reduce (no onehot/true_dist temps).
    col_ids = jax.lax.broadcasted_iota(jnp.int32, (tn, c), dimension=1)
    pred_t = jnp.sum(jnp.where(col_ids == tgt, pred, 0.0),
                     axis=-1, keepdims=True)                               # (tn,1)

    # per_row = sum_c -true_dist[c] * logp[c] with
    #   logp = pred - m - lse,
    #   true_dist = fill everywhere, confidence at target.
    m_lse = m + lse
    per_row = -(jnp.float32(fill) * (sum_pred - jnp.float32(c) * m_lse)
                + jnp.float32(confidence - fill) * (pred_t - m_lse))       # (tn,1)

    # Mask rows beyond the true batch size (padded final block).
    i = pl.program_id(0)
    row_ids = i * tile_n + jax.lax.broadcasted_iota(jnp.int32, (tn, 1), 0)
    valid = row_ids < n_total
    partial_ref[0, 0] = jnp.sum(jnp.where(valid, per_row, 0.0))


def label_smoothing_loss(pred, target, *, classes, smoothing=0.1):
    """pred: (N, C) float, target: (N,) int -> scalar f32 loss (mean over N)."""
    n, c = pred.shape
    if c != classes:
        raise ValueError(f"pred has {c} classes, expected {classes}")
    if classes <= 1:
        raise ValueError("LabelSmoothingLoss requires classes > 1")

    confidence = 1.0 - smoothing
    fill = smoothing / (classes - 1)

    tile_n = _choose_tile_n(n, c, jnp.dtype(pred.dtype).itemsize)
    num_blocks = pl.cdiv(n, tile_n)

    target_2d = target.astype(jnp.int32).reshape(n, 1)

    kernel = functools.partial(
        _label_smoothing_kernel,
        n_total=n,
        tile_n=tile_n,
        fill=float(fill),
        confidence=float(confidence),
    )

    partials = pl.pallas_call(
        kernel,
        out_shape=jax.ShapeDtypeStruct((num_blocks, 1), jnp.float32),
        grid=(num_blocks,),
        in_specs=[
            pl.BlockSpec((tile_n, 1), lambda i: (i, 0)),   # target (VMEM)
            pl.BlockSpec((tile_n, c), lambda i: (i, 0)),   # pred   (VMEM, pipelined)
        ],
        out_specs=pl.BlockSpec((1, 1), lambda i: (i, 0),
                               memory_space=pltpu.SMEM),   # per-block partial sum
        compiler_params=pltpu.CompilerParams(
            dimension_semantics=("parallel",),
            vmem_limit_bytes=_VMEM_LIMIT_BYTES,
        ),
    )(target_2d, pred)

    return jnp.sum(partials) / jnp.float32(n)


def _reference(pred, target, *, classes, smoothing=0.1):
    # Pure-JAX reference matching the PyTorch forward exactly.
    confidence = 1.0 - smoothing
    logp = jax.nn.log_softmax(pred.astype(jnp.float32), axis=-1)
    fill = smoothing / (classes - 1)
    onehot = jax.nn.one_hot(target, classes, dtype=jnp.float32)
    true_dist = onehot * confidence + (1.0 - onehot) * fill
    return jnp.mean(jnp.sum(-true_dist * logp, axis=-1))


if __name__ == "__main__":
    key = jax.random.PRNGKey(0)
    k_pred, k_tgt, k_pred2, k_tgt2 = jax.random.split(key, 4)

    # Primary small test: batch=8, classes=32.
    batch, classes = 8, 32
    pred = jax.random.normal(k_pred, (batch, classes), dtype=jnp.float32)
    target = jax.random.randint(k_tgt, (batch,), 0, classes, dtype=jnp.int32)

    loss = label_smoothing_loss(pred, target, classes=classes, smoothing=0.1)
    loss = jax.block_until_ready(loss)
    ref = _reference(pred, target, classes=classes, smoothing=0.1)
    assert jnp.allclose(loss, ref, atol=1e-5, rtol=1e-5), (loss, ref)

    # Second check exercising the masked partial final block (N=12, TILE_N=8).
    batch2 = 12
    pred2 = jax.random.normal(k_pred2, (batch2, classes), dtype=jnp.float32)
    target2 = jax.random.randint(k_tgt2, (batch2,), 0, classes, dtype=jnp.int32)
    loss2 = jax.block_until_ready(
        label_smoothing_loss(pred2, target2, classes=classes, smoothing=0.1))
    ref2 = _reference(pred2, target2, classes=classes, smoothing=0.1)
    assert jnp.allclose(loss2, ref2, atol=1e-5, rtol=1e-5), (loss2, ref2)

    print("KERNEL_OK")
</pallas_src>

<mosaic_0001>
module attributes {stable_mosaic.version = 11 : i64} {
  func.func @_label_smoothing_kernel(%arg0: i32, %arg1: memref<8x1xi32, #tpu.memory_space<vmem>>, %arg2: memref<8x32xf32, #tpu.memory_space<vmem>>, %arg3: memref<1x1xf32, #tpu.memory_space<smem>>) attributes {dimension_semantics = [#tpu.dimension_semantics<parallel>], iteration_bounds = array<i64: 1>, scalar_prefetch = 0 : i64, scratch_operands = 0 : i64, tpu.core_type = #tpu.core_type<tc>, window_params = [{transform_indices = @transform_0, window_bounds = array<i64: 8, 1>}, {transform_indices = @transform_1, window_bounds = array<i64: 8, 32>}, {transform_indices = @transform_2, window_bounds = array<i64: 1, 1>}]} {
    %c0 = arith.constant 0 : index
    %c0_0 = arith.constant 0 : index
    %0 = vector.load %arg2[%c0, %c0_0] : memref<8x32xf32, #tpu.memory_space<vmem>>, vector<8x32xf32>
    %c0_1 = arith.constant 0 : index
    %c0_2 = arith.constant 0 : index
    %1 = vector.load %arg1[%c0_1, %c0_2] : memref<8x1xi32, #tpu.memory_space<vmem>>, vector<8x1xi32>
    %cst = arith.constant dense<0xFF800000> : vector<8xf32>
    %2 = vector.multi_reduction <maximumf>, %0, %cst [1] : vector<8x32xf32> to vector<8xf32>
    %3 = vector.shape_cast %2 : vector<8xf32> to vector<8x1xf32>
    %4 = vector.broadcast %3 : vector<8x1xf32> to vector<8x32xf32>
    %5 = arith.subf %0, %4 : vector<8x32xf32>
    %6 = math.exp %5 : vector<8x32xf32>
    %cst_3 = arith.constant dense<0.000000e+00> : vector<8xf32>
    %7 = vector.multi_reduction <add>, %6, %cst_3 [1] : vector<8x32xf32> to vector<8xf32>
    %8 = vector.shape_cast %7 : vector<8xf32> to vector<8x1xf32>
    %9 = math.log %8 : vector<8x1xf32>
    %cst_4 = arith.constant dense<0.000000e+00> : vector<8xf32>
    %10 = vector.multi_reduction <add>, %0, %cst_4 [1] : vector<8x32xf32> to vector<8xf32>
    %11 = vector.shape_cast %10 : vector<8xf32> to vector<8x1xf32>
    %12 = tpu.iota {dimensions = array<i32: 1>} : vector<8x32xi32>
    %13 = vector.broadcast %1 : vector<8x1xi32> to vector<8x32xi32>
    %14 = arith.cmpi eq, %12, %13 : vector<8x32xi32>
    %cst_5 = arith.constant 0.000000e+00 : f32
    %15 = vector.broadcast %cst_5 : f32 to vector<8x32xf32>
    %16 = arith.select %14, %0, %15 : vector<8x32xi1>, vector<8x32xf32>
    %cst_6 = arith.constant dense<0.000000e+00> : vector<8xf32>
    %17 = vector.multi_reduction <add>, %16, %cst_6 [1] : vector<8x32xf32> to vector<8xf32>
    %18 = vector.shape_cast %17 : vector<8xf32> to vector<8x1xf32>
    %19 = arith.addf %3, %9 : vector<8x1xf32>
    %cst_7 = arith.constant 3.200000e+01 : f32
    %20 = vector.broadcast %cst_7 : f32 to vector<8x1xf32>
    %21 = arith.mulf %20, %19 : vector<8x1xf32>
    %22 = arith.subf %11, %21 : vector<8x1xf32>
    %cst_8 = arith.constant 0.0032258064 : f32
    %23 = vector.broadcast %cst_8 : f32 to vector<8x1xf32>
    %24 = arith.mulf %23, %22 : vector<8x1xf32>
    %25 = arith.subf %18, %19 : vector<8x1xf32>
    %cst_9 = arith.constant 0.896774172 : f32
    %26 = vector.broadcast %cst_9 : f32 to vector<8x1xf32>
    %27 = arith.mulf %26, %25 : vector<8x1xf32>
    %28 = arith.addf %24, %27 : vector<8x1xf32>
    %cst_10 = arith.constant 0.000000e+00 : f32
    %29 = vector.broadcast %cst_10 : f32 to vector<8x1xf32>
    %30 = arith.subf %29, %28 : vector<8x1xf32>
    %c8_i32 = arith.constant 8 : i32
    %31 = arith.muli %arg0, %c8_i32 : i32
    %32 = tpu.iota {dimensions = array<i32: 0>} : vector<8x1xi32>
    %33 = vector.broadcast %31 : i32 to vector<8x1xi32>
    %34 = arith.addi %33, %32 : vector<8x1xi32>
    %c8_i32_11 = arith.constant 8 : i32
    %35 = vector.broadcast %c8_i32_11 : i32 to vector<8x1xi32>
    %36 = arith.cmpi slt, %34, %35 : vector<8x1xi32>
    %cst_12 = arith.constant 0.000000e+00 : f32
    %37 = vector.broadcast %cst_12 : f32 to vector<8x1xf32>
    %38 = arith.select %36, %30, %37 : vector<8x1xi1>, vector<8x1xf32>
    %39 = vector.shape_cast %38 : vector<8x1xf32> to vector<1x8x1xf32>
    %cst_13 = arith.constant dense<0.000000e+00> : vector<1xf32>
    %40 = vector.multi_reduction <add>, %39, %cst_13 [1, 2] : vector<1x8x1xf32> to vector<1xf32>
    %41 = vector.shape_cast %40 : vector<1xf32> to vector<1x1x1xf32>
    %42 = vector.extract %41[0, 0, 0] : f32 from vector<1x1x1xf32>
    %c0_14 = arith.constant 0 : index
    %c0_15 = arith.constant 0 : index
    %43 = memref.load %arg3[%c0_14, %c0_15] : memref<1x1xf32, #tpu.memory_space<smem>>
    memref.store %42, %arg3[%c0_14, %c0_15] : memref<1x1xf32, #tpu.memory_space<smem>>
    return
  }
  func.func @transform_0(%arg0: i32) -> (i32, i32) {
    %c0_i32 = arith.constant 0 : i32
    %c0_i32_0 = arith.constant 0 : i32
    return %arg0, %c0_i32 : i32, i32
  }
  func.func @transform_1(%arg0: i32) -> (i32, i32) {
    %c0_i32 = arith.constant 0 : i32
    %c0_i32_0 = arith.constant 0 : i32
    return %arg0, %c0_i32 : i32, i32
  }
  func.func @transform_2(%arg0: i32) -> (i32, i32) {
    %c0_i32 = arith.constant 0 : i32
    %c0_i32_0 = arith.constant 0 : i32
    return %arg0, %c0_i32 : i32, i32
  }
}

</mosaic_0001>

<bundles_post_ra>
// kernel: tpu_custom_call.1
= control target key start
LH: loop header
LB: loop body
LE: loop exit
PB: predicated region body
PF: predicated region fallthrough
CT: control target
= control target key end

     0   :  { %vm14_vm0 = vcmask 261120   ;;  %s140_s0 = inlined_call_operand.vmem [shape: s32[8,1], index: 0, kind: input, shape index: {}]   ;;  %s141_s1 = inlined_call_operand.vmem [shape: f32[8,32], index: 1, kind: input, shape index: {}]   ;;  %s142_s2 = inlined_call_operand.hbm [shape: f32[1,1], index: 2, kind: output, shape index: {}]  }
   0x1   :  { %v12_v0 = vld [vmem:[%s141_s1] sm:$0xff] }
   0x2   :  { %7 = vsyncpa [#allocation3], 0  ;;  %v15_v1 = vsel %vm14_vm0, %v12_v0, -inf  ;;  %v101_v2 = vmov 0   ;;  %v13_v3 = vld [vmem:[%s140_s0] sm:$0xff]  ;;  %v29_v7 = vlaneseq  ;;  %v26_v12 = vsel %vm14_vm0, %v12_v0, 0.0 }
   0x3   :  { %84 = vset.pattern.permute.xlu0 %v101_v2  ;;  %vm54_vm2 = vcmask 7168   ;;  %s89_s14 = scalar_lea.hbm %s142_s2, 16 }
   0x4   :  { %16 = vmax.xlane.f32.xlu0 %v15_v1  ;;  %v30_v8 = vand.u32 127, %v29_v7  ;;  %p90_p0 = scmp.ne.s32.totalorder %s142_s2, %s89_s14  ;;  %p93_p1 = scmp.lt.u32.totalorder %s89_s14, %s142_s2 }
   0x6   :  { %p95_p2 = pnand %p93_p1, %p90_p0 }
  0x1a   :  { %32 = vperm.xlu0 %84, %v13_v3  }
  0x91   :  { %v17_v4 = vpop.xlane.xlu0 %16 }
  0x92   :  { %v18_v5 = vsub.f32 %v12_v0, %v17_v4 }
  0x94   :  { %v19_v6 = vmul.f32 1.442695, %v18_v5 }
  0x96   :  { %85 = vpow2.f32 %v19_v6 }
  0x99   :  { %v33_v9 = vpop.permute.xlu0 %32 }
  0x9a   :  { %vm34_vm1 = vcmp.eq.s32.totalorder %v30_v8, %v33_v9 }
  0x9b   :  { %v35_v13 = vsel %vm34_vm1, %v12_v0, 0.0 }
  0x9c   :  { %v36_v14 = vsel %vm14_vm0, %v35_v13, 0.0 }
  0xa0   :  { %v86_v10 = vpop.eup %85 }
  0xa1   :  { %v21_v11 = vsel %vm14_vm0, %v86_v10, 0.0 }
  0xa2   :  { %22 = vadd.xlane.f32.xlu1 %v21_v11 }
  0xa6   :  { %27 = vadd.xlane.f32.xlu1 %v26_v12 }
  0xaa   :  { %37 = vadd.xlane.f32.xlu1 %v36_v14 }
 0x12f   :  { %v23_v15 = vpop.xlane.xlu1 %22 }
 0x130   :  { %87 = vlog2.f32 %v23_v15 }
 0x133   :  { %v28_v16 = vpop.xlane.xlu1 %27 }
 0x137   :  { %v38_v19 = vpop.xlane.xlu1 %37 }
 0x13a   :  { %v88_v17 = vpop.eup %87 }
 0x13b   :  { %v25_v18 = vmul.f32 0.6931472, %v88_v17 }
 0x13d   :  { %v39_v20 = vadd.f32 %v25_v18, %v17_v4 }
 0x13f   :  { %v40_v21 = vmul.f32 32.0, %v39_v20  ;;  %v43_v22 = vsub.f32 %v38_v19, %v39_v20 }
 0x141   :  { %v41_v23 = vsub.f32 %v28_v16, %v40_v21  ;;  %v44_v25 = vmul.f32 0.8967742, %v43_v22 }
 0x143   :  { %v42_v24 = vmul.f32 0.0032258064, %v41_v23 }
 0x145   :  { %v45_v26 = vadd.f32 %v44_v25, %v42_v24 }
 0x147   :  { %v46_v27 = vsub.f32 0.0, %v45_v26 }
 0x149   :  { %v55_v28 = vsel %vm54_vm2, %v46_v27, 0.0 }
 0x14a   :  { %56 = vadd.xlane.f32.xlu1 %v55_v28 }
 0x1d7   :  { %v57_v29 = vpop.xlane.xlu1 %56 }
 0x1d8   :  { %v58_v30 = vrot.slane %v57_v29, 4 }
 0x1da   :  { %v59_v31 = vadd.f32 %v58_v30, %v57_v29 }
 0x1dc   :  { %v60_v32 = vrot.slane %v59_v31, 2 }
 0x1de   :  { %v61_v33 = vadd.f32 %v60_v32, %v59_v31 }
 0x1e0   :  { %v62_v34 = vrot.slane %v61_v33, 1 }
 0x1e2   :  { %v63_v35 = vadd.f32 %v62_v34, %v61_v33 }
 0x1e4   :  { %80 = vpush %v63_v35 }
 0x215   :  { %s81_s0 = spop %80 }
 0x216   :  { %66 = sst [smem:[#allocation2]] %s81_s0 }
 0x217   :  { %98 = shalt.err (!%p95_p2)
}
 0x218   :  { %s102_s19 = smov [#allocation2]  }
 0x219   :  { %74 = dma.smem_to_hbm %s102_s19, 16, %s142_s2, [#allocation3]  }
 0x21a   :  { %99 = dma.done.wait [#allocation3], 16  }
 0x21b   :  { %100 = vsyncadd [#allocation3], 4294967280 }
 0x21c   :  { %78 = sfence }
 0x21d   :  { %79 = vsyncpa [#allocation3], 1 }

</bundles_post_ra>
